<compile_context>
chip_gen: v7x
topology: tpu7x:2x2x1
jax: 0.10.0
libtpu: 0.0.40
codegen_flags: <defaults>
</compile_context>

<pallas_src>
import functools
import math

import jax
import jax.numpy as jnp
from jax.experimental import pallas as pl
from jax.experimental.pallas import tpu as pltpu


# ----------------------------------------------------------------------------- kernels

def _shortcut_rows_kernel(x_ref, o_ref, *, c_in, pad):
    """Lane-dense path; requires c_out == 2*c_in (true for every ResNet26 shortcut).

    x_ref: (rb, Lin) rows of even-H pixels.  The first L = W*c_in lanes are the even-H
           row flattened as (W, c_in); any extra lanes (odd-H pixels, NHWC entry) are
           ignored.
    o_ref: (rb, L)   output rows flattened as (w_out, c_out), c_out == 2*c_in: per
           output pixel w the lane group is [pad zeros | even-W channels | pad zeros].
    """
    L = o_ref.shape[-1]
    group = 2 * c_in                        # lanes per output pixel group (== c_out)
    x = x_ref[:, :L]                        # drop odd-H lanes if present (no-op otherwise)
    # Output lane w*group + oc (pad <= oc < pad + c_in) sources input lane
    # w*group + (oc - pad): a single uniform lane rotate of the whole row by `pad`.
    if L % 128 == 0:
        shifted = pltpu.roll(x, pad, 1)     # XLU rotate -> leaves ld/st slots for streaming
    else:
        shifted = jnp.roll(x, pad, axis=1)  # small-lane fallback (demo-sized shapes)
    # Keep-mask built once at (1, L); the select broadcasts it over the rows.
    lane = jax.lax.broadcasted_iota(jnp.int32, (1, L), 1)
    oc = lane % group
    keep = jnp.logical_and(oc >= pad, oc < pad + c_in)
    o_ref[...] = jnp.where(keep, shifted, jnp.zeros_like(shifted))


def _shortcut_pad_kernel(x_ref, o_ref, *, c_in, pad):
    """General-pad fallback (c_out != 2*c_in; never hit by ResNet26 stages).

    x_ref: (rb, w_out, 2*c_in) even-H rows, per pixel [even-W chans | odd-W chans].
    o_ref: (rb, w_out, c_out)
    """
    o_ref[...] = jnp.zeros_like(o_ref)
    o_ref[:, :, pad:pad + c_in] = x_ref[:, :, :c_in]


# ----------------------------------------------------------------------------- tuning

def _chip_tuning():
    """Per-step byte budget / minimum grid steps, derived from the chip we run on."""
    vmem_cap = 128 * 1024 * 1024
    try:
        vmem_cap = int(pltpu.get_tpu_info().vmem_capacity_bytes)
    except Exception:  # query unavailable (e.g. interpret mode) -> safe defaults
        pass
    if vmem_cap <= 64 * 1024 * 1024:
        # v7x-like: 64 MiB VMEM, 2 TensorCores, 3.2 TB/s HBM -> ~8 MiB steps and keep
        # >= 2 "parallel" grid steps so both cores get work.
        return {"target_block_bytes": 8 << 20, "min_steps": 2, "vmem_cap": vmem_cap}
    # v5e / v6e: single TensorCore, 128 MiB VMEM -> bigger steps, grid of 1 is fine.
    return {"target_block_bytes": 16 << 20, "min_steps": 1, "vmem_cap": vmem_cap}


def _pick_rows_per_step(n_rows, row_bytes, itemsize, target_block_bytes, min_steps):
    """Largest divisor of n_rows that (a) keeps the per-step block under the byte
    budget, (b) leaves >= min_steps grid steps, and (c) keeps the sublane block dim a
    multiple of the dtype's sublane tile (8 f32 / 16 bf16) or the full dimension."""
    cap = min(n_rows, max(1, target_block_bytes // max(row_bytes, 1)))
    if min_steps > 1:
        cap = min(cap, max(1, n_rows // min_steps))
    sub = 8 * max(1, 4 // max(itemsize, 1))
    cands = [d for d in range(1, n_rows + 1)
             if n_rows % d == 0 and (d % sub == 0 or d == n_rows)]
    fitting = [d for d in cands if d <= cap]
    return max(fitting) if fitting else min(cands)


# ----------------------------------------------------------------------------- plumbing

def _rows_pallas_call(kernel, x_rows, out_shape):
    """Shared pallas_call plumbing: 1-D 'parallel' grid over blocks of rows.  All
    non-leading block dims equal the full array dims (tiling-safe, dense stores)."""
    n_rows = x_rows.shape[0]
    itemsize = jnp.dtype(x_rows.dtype).itemsize
    in_row = math.prod(x_rows.shape[1:])
    out_row = math.prod(out_shape.shape[1:])
    row_bytes = (in_row + out_row) * itemsize

    tune = _chip_tuning()
    rb = _pick_rows_per_step(n_rows, row_bytes, itemsize,
                             tune["target_block_bytes"], tune["min_steps"])
    grid = (n_rows // rb,)
    block_bytes = rb * row_bytes
    # Double-buffered in+out blocks plus headroom, capped well under physical VMEM.
    vmem_limit = int(min(max(2 * block_bytes + (8 << 20), 16 << 20),
                         (tune["vmem_cap"] * 3) // 4))

    in_block = (rb,) + tuple(x_rows.shape[1:])
    out_block = (rb,) + tuple(out_shape.shape[1:])
    nd_in = len(in_block)
    nd_out = len(out_block)

    return pl.pallas_call(
        kernel,
        out_shape=out_shape,
        grid=grid,
        in_specs=[pl.BlockSpec(in_block, lambda i: (i,) + (0,) * (nd_in - 1))],
        out_specs=pl.BlockSpec(out_block, lambda i: (i,) + (0,) * (nd_out - 1)),
        compiler_params=pltpu.CompilerParams(
            dimension_semantics=("parallel",),
            vmem_limit_bytes=vmem_limit),
        cost_estimate=pl.CostEstimate(
            flops=0, transcendentals=0,
            bytes_accessed=int(n_rows * row_bytes)),
    )(x_rows)


# ----------------------------------------------------------------------------- entries

def lambda_layer_cifar_nhwc(x_nhwc, planes):
    """Option-A shortcut on an NHWC activation -> NHWC output.  No layout transposes
    anywhere; this is the entry to use in an NHWC end-to-end ResNet."""
    B, H, W, C = x_nhwc.shape
    assert H % 2 == 0 and W % 2 == 0, "spatial dims must be even (CIFAR stages are)"
    pad = planes // 4
    h_out, w_out = H // 2, W // 2
    c_out = C + 2 * pad
    n_rows = B * h_out
    dtype = x_nhwc.dtype

    if c_out == 2 * C:
        # Flat lane-dense path (every real ResNet26 shortcut: W*C = 512 lanes).
        # Row r = (image, output row h); lanes = [even-H pixels (W*C) | odd-H pixels].
        x_rows = x_nhwc.reshape(n_rows, 2 * W * C)
        out_rows = _rows_pallas_call(
            functools.partial(_shortcut_rows_kernel, c_in=C, pad=pad),
            x_rows, jax.ShapeDtypeStruct((n_rows, W * C), dtype))
        return out_rows.reshape(B, h_out, w_out, c_out)

    # General pad fallback: pre-select even H rows, keep (w, 2C) lane groups.
    x_rows = x_nhwc[:, ::2].reshape(n_rows, w_out, 2 * C)
    out_rows = _rows_pallas_call(
        functools.partial(_shortcut_pad_kernel, c_in=C, pad=pad),
        x_rows, jax.ShapeDtypeStruct((n_rows, w_out, c_out), dtype))
    return out_rows.reshape(B, h_out, w_out, c_out)


def lambda_layer_cifar(x_nchw, planes):
    """Pallas equivalent of the BasicBlockCifar option-A shortcut lambda:
        F.pad(x[:, :, ::2, ::2], (0, 0, 0, 0, planes // 4, planes // 4))
    Input and output are NCHW to match the PyTorch module.  The NCHW<->NHWC layout
    glue runs once, outside the kernel, on the already H-subsampled tensor (half the
    input bytes); the kernel itself never sees a transpose.
    # TODO(synk): with an NHWC end-to-end ResNet (or this shortcut fused into the
    # residual add that consumes it) use lambda_layer_cifar_nhwc - the wrapper
    # transposes vanish entirely.
    """
    B, C, H, W = x_nchw.shape
    assert H % 2 == 0 and W % 2 == 0, "spatial dims must be even (CIFAR stages are)"
    pad = planes // 4
    h_out, w_out = H // 2, W // 2
    c_out = C + 2 * pad
    n_rows = B * h_out
    dtype = x_nchw.dtype

    # Even-H slice *before* the transpose so the single layout pass moves X/2 bytes
    # (XLA fuses the strided slice into the transpose copy).
    x_he = jnp.transpose(x_nchw[:, :, ::2, :], (0, 2, 3, 1))        # (B, h_out, W, C)

    if c_out == 2 * C:
        out_rows = _rows_pallas_call(
            functools.partial(_shortcut_rows_kernel, c_in=C, pad=pad),
            x_he.reshape(n_rows, W * C),
            jax.ShapeDtypeStruct((n_rows, W * C), dtype))
    else:
        out_rows = _rows_pallas_call(
            functools.partial(_shortcut_pad_kernel, c_in=C, pad=pad),
            x_he.reshape(n_rows, w_out, 2 * C),
            jax.ShapeDtypeStruct((n_rows, w_out, c_out), dtype))

    out_nhwc = out_rows.reshape(B, h_out, w_out, c_out)
    # NHWC -> NCHW on the 2x-smaller output (the cheap direction).
    return jnp.transpose(out_nhwc, (0, 3, 1, 2))


if __name__ == "__main__":
    key = jax.random.PRNGKey(0)

    def reference_nchw(x, planes):
        p = planes // 4
        return jnp.pad(x[:, :, ::2, ::2], ((0, 0), (p, p), (0, 0), (0, 0)))

    shortcut_nchw = jax.jit(lambda_layer_cifar, static_argnums=1)
    shortcut_nhwc = jax.jit(lambda_layer_cifar_nhwc, static_argnums=1)

    # Small demo shape (module-facing NCHW interface): (2, 4, 16, 16) -> (2, 8, 8, 8).
    B, C, H, W = 2, 4, 16, 16
    planes = 8
    k1, k2, k3 = jax.random.split(key, 3)
    x = jax.random.normal(k1, (B, C, H, W), dtype=jnp.float32)
    out = jax.block_until_ready(shortcut_nchw(x, planes))
    ref = reference_nchw(x, planes)
    assert out.shape == ref.shape, out.shape
    assert out.dtype == x.dtype
    assert jnp.array_equal(out, ref), "mismatch vs reference (NCHW, small shape)"

    # Same op through the NHWC-native entry (no wrapper transposes at all).
    x_nhwc = jnp.transpose(x, (0, 2, 3, 1))
    out_nhwc = jax.block_until_ready(shortcut_nhwc(x_nhwc, planes))
    assert jnp.array_equal(out_nhwc, jnp.transpose(ref, (0, 2, 3, 1))), \
        "mismatch vs reference (NHWC entry)"

    # Real ResNet26 stage-2 shortcut: (B, 16, 32, 32) -> (B, 32, 16, 16).
    x2 = jax.random.normal(k2, (2, 16, 32, 32), dtype=jnp.float32)
    out2 = jax.block_until_ready(shortcut_nchw(x2, 32))
    assert jnp.array_equal(out2, reference_nchw(x2, 32)), "mismatch (stage-2 shape)"

    # Real ResNet26 stage-3 shortcut: (B, 32, 16, 16) -> (B, 64, 8, 8).
    x3 = jax.random.normal(k3, (2, 32, 16, 16), dtype=jnp.float32)
    out3 = jax.block_until_ready(shortcut_nchw(x3, 64))
    assert jnp.array_equal(out3, reference_nchw(x3, 64)), "mismatch (stage-3 shape)"

    print("KERNEL_OK")
</pallas_src>

<mosaic_0001>
module attributes {stable_mosaic.version = 11 : i64} {
  func.func @_shortcut_rows_kernel(%arg0: i32, %arg1: memref<16x64xf32, #tpu.memory_space<vmem>>, %arg2: memref<16x64xf32, #tpu.memory_space<vmem>>) attributes {dimension_semantics = [#tpu.dimension_semantics<parallel>], iteration_bounds = array<i64: 1>, scalar_prefetch = 0 : i64, scratch_operands = 0 : i64, tpu.core_type = #tpu.core_type<tc>, window_params = [{transform_indices = @transform_0, window_bounds = array<i64: 16, 64>}, {transform_indices = @transform_1, window_bounds = array<i64: 16, 64>}]} {
    %c0 = arith.constant 0 : index
    %c0_0 = arith.constant 0 : index
    %0 = vector.load %arg1[%c0, %c0_0] : memref<16x64xf32, #tpu.memory_space<vmem>>, vector<16x64xf32>
    %1 = vector.extract_strided_slice %0 {offsets = [0, 62], sizes = [16, 2], strides = [1, 1]} : vector<16x64xf32> to vector<16x2xf32>
    %2 = vector.extract_strided_slice %0 {offsets = [0, 0], sizes = [16, 62], strides = [1, 1]} : vector<16x64xf32> to vector<16x62xf32>
    %3 = tpu.concatenate %1, %2 in 1 : vector<16x2xf32>, vector<16x62xf32> -> vector<16x64xf32>
    %4 = tpu.iota {dimensions = array<i32: 1>} : vector<1x64xi32>
    %c8_i32 = arith.constant 8 : i32
    %c0_i32 = arith.constant 0 : i32
    %5 = arith.cmpi eq, %c8_i32, %c0_i32 : i32
    %c1_i32 = arith.constant 1 : i32
    %6 = arith.select %5, %c1_i32, %c8_i32 : i32
    %7 = vector.broadcast %6 : i32 to vector<1x64xi32>
    %8 = arith.remsi %4, %7 : vector<1x64xi32>
    %c0_i32_1 = arith.constant 0 : i32
    %9 = vector.broadcast %c0_i32_1 : i32 to vector<1x64xi32>
    %10 = arith.cmpi ne, %8, %9 : vector<1x64xi32>
    %c0_i32_2 = arith.constant 0 : i32
    %11 = vector.broadcast %c0_i32_2 : i32 to vector<1x64xi32>
    %12 = arith.cmpi slt, %8, %11 : vector<1x64xi32>
    %c0_i32_3 = arith.constant 0 : i32
    %13 = arith.cmpi slt, %6, %c0_i32_3 : i32
    %14 = vector.broadcast %13 : i1 to vector<1x64xi1>
    %15 = vector.broadcast %14 : vector<1x64xi1> to vector<1x64xi1>
    %16 = arith.xori %12, %15 : vector<1x64xi1>
    %17 = arith.andi %16, %10 : vector<1x64xi1>
    %18 = vector.broadcast %6 : i32 to vector<1x64xi32>
    %19 = arith.addi %8, %18 : vector<1x64xi32>
    %20 = arith.select %17, %19, %8 : vector<1x64xi1>, vector<1x64xi32>
    %c2_i32 = arith.constant 2 : i32
    %21 = vector.broadcast %c2_i32 : i32 to vector<1x64xi32>
    %22 = arith.cmpi sge, %20, %21 : vector<1x64xi32>
    %c6_i32 = arith.constant 6 : i32
    %23 = vector.broadcast %c6_i32 : i32 to vector<1x64xi32>
    %24 = arith.cmpi slt, %20, %23 : vector<1x64xi32>
    %25 = arith.andi %22, %24 : vector<1x64xi1>
    %cst = arith.constant 0.000000e+00 : f32
    %26 = vector.broadcast %cst : f32 to vector<16x64xf32>
    %27 = vector.shape_cast %25 : vector<1x64xi1> to vector<1x64xi1>
    %28 = vector.broadcast %27 : vector<1x64xi1> to vector<16x64xi1>
    %29 = arith.select %28, %3, %26 : vector<16x64xi1>, vector<16x64xf32>
    %c0_4 = arith.constant 0 : index
    %c0_5 = arith.constant 0 : index
    %30 = vector.load %arg2[%c0_4, %c0_5] : memref<16x64xf32, #tpu.memory_space<vmem>>, vector<16x64xf32>
    tpu.vector_store %arg2[%c0_4, %c0_5], %29 {strides = array<i32>} : memref<16x64xf32, #tpu.memory_space<vmem>>, vector<16x64xf32>,
    return
  }
  func.func @transform_0(%arg0: i32) -> (i32, i32) {
    %c0_i32 = arith.constant 0 : i32
    %c0_i32_0 = arith.constant 0 : i32
    return %arg0, %c0_i32 : i32, i32
  }
  func.func @transform_1(%arg0: i32) -> (i32, i32) {
    %c0_i32 = arith.constant 0 : i32
    %c0_i32_0 = arith.constant 0 : i32
    return %arg0, %c0_i32 : i32, i32
  }
}

</mosaic_0001>

<bundles_post_ra>
// kernel: lambda_layer_cifar.1
= control target key start
LH: loop header
LB: loop body
LE: loop exit
PB: predicated region body
PF: predicated region fallthrough
CT: control target
= control target key end

     0   :  { %s57_s8 = smov 2   ;;  %s58_s9 = smov 66   ;;  %v27_v2 = vlaneseq  ;;  %vm24_vm2 = vcmask 15360   ;;  %vm48_vm4 = vcmask 523264   ;;  %s81_s0 = inlined_call_operand.vmem [shape: f32[16,64], index: 0, kind: input, shape index: {}]   ;;  %s82_s1 = inlined_call_operand.vmem [shape: f32[16,64], index: 1, kind: output, shape index: {}]  }
   0x1   :  { %v8_v0 = vld [vmem:[%s81_s0] sm:$0xff]  ;;  %v9_v1 = vld [vmem:[%s81_s0 + $0x8] sm:$0xff] }
   0x2   :  { %18 = vrot.lane.b32.xlu1 %v8_v0, %s57_s8  ;;  %12 = vrot.lane.b32.xlu0 %v8_v0, %s58_s9  ;;  %v28_v3 = vand.u32 127, %v27_v2 }
   0x4   :  { %v33_v4 = vand.u32 7, %v28_v3 }
   0x6   :  { %20 = vrot.lane.b32.xlu1 %v9_v1, %s57_s8  ;;  %14 = vrot.lane.b32.xlu0 %v9_v1, %s58_s9  ;;  %vm41_vm0 = vcmp.ge.s32.totalorder %v33_v4, 2  ;;  %vm42_vm1 = vcmp.lt.s32.totalorder %v33_v4, 6 }
   0x7   :  { %vm43_vm3 = vmand %vm41_vm0, %vm42_vm1 }
  0x74   :  { %v19_v5 = vpop.permute.xlu1 %18  ;;  %v13_v6 = vpop.permute.xlu0 %12 }
  0x75   :  { %v25_v7 = vsel %vm24_vm2, %v13_v6, %v19_v5 }
  0x76   :  { %v46_v8 = vsel %vm43_vm3, %v25_v7, 0.0 }
  0x77   :  { %49 = vst.msk [vmem:[%s82_s1] sm:$0xff] %vm48_vm4, %v46_v8 }
  0x78   :  { %v21_v9 = vpop.permute.xlu1 %20  ;;  %v15_v10 = vpop.permute.xlu0 %14 }
  0x79   :  { %v26_v11 = vsel %vm24_vm2, %v15_v10, %v21_v9 }
  0x7a   :  { %v47_v12 = vsel %vm43_vm3, %v26_v11, 0.0 }
  0x7b   :  { %50 = vst.msk [vmem:[%s82_s1 + $0x8] sm:$0xff] %vm48_vm4, %v47_v12 }

</bundles_post_ra>
